<compile_context>
chip_gen: v7x
topology: tpu7x:2x2x1
jax: 0.10.0
libtpu: 0.0.40
codegen_flags: <defaults>
</compile_context>

<pallas_src>
import functools

import jax
import jax.numpy as jnp
from jax.experimental import pallas as pl
from jax.experimental.pallas import tpu as pltpu


def _dice_kernel(x_ref, t_ref, inter_ref, xt_ref):
    """One (TR, TL) slab of one sample.

    x_ref, t_ref : (TR, TL) VMEM tiles (native dtype).
    inter_ref    : (1, 1) f32 output block, resident across the k axis;
                   accumulates sum(x * t) for the current sample.
    xt_ref       : (1, 1) f32 output block; accumulates sum(x + t).
    """
    k = pl.program_id(1)

    @pl.when(k == 0)
    def _init():
        inter_ref[...] = jnp.zeros_like(inter_ref)
        xt_ref[...] = jnp.zeros_like(xt_ref)

    x = x_ref[...].astype(jnp.float32)
    t = t_ref[...].astype(jnp.float32)

    # Two full-tile reductions per step (merged x+t accumulator saves one).
    inter_ref[...] = inter_ref[...] + jnp.sum(x * t)
    xt_ref[...] = xt_ref[...] + jnp.sum(x + t)


@functools.partial(jax.jit, static_argnames=("lane_tile", "max_row_tile"))
def binary_dice_loss(inputs, targets, *, lane_tile=512, max_row_tile=1024):
    """Pallas implementation of BinaryDiceLoss.forward (forward semantics only)."""
    n = targets.shape[0]
    x = inputs.reshape(n, -1)   # keep native dtype; kernel casts to f32
    t = targets.reshape(n, -1)
    d = x.shape[1]

    tl = lane_tile
    assert tl % 128 == 0, "lane_tile must be a multiple of 128"
    assert max_row_tile % 8 == 0, "max_row_tile must be a multiple of 8"

    # Rows of TL lanes per sample (pad D up so it factors cleanly).
    r = -(-d // tl)                      # cdiv(d, tl)
    if r <= max_row_tile:
        tr = r                           # block covers full row dim -> no 8-div needed
        r_pad = r
    else:
        tr = max_row_tile                # multiple of 8
        r_pad = -(-r // tr) * tr
    d_pad = r_pad * tl
    if d_pad != d:
        # Zero padding is neutral for sum(x*t) and sum(x+t).
        x = jnp.pad(x, ((0, 0), (0, d_pad - d)))
        t = jnp.pad(t, ((0, 0), (0, d_pad - d)))

    x3 = x.reshape(n, r_pad, tl)
    t3 = t.reshape(n, r_pad, tl)
    k_steps = r_pad // tr

    inter_sum, xt_sum = pl.pallas_call(
        _dice_kernel,
        out_shape=(
            jax.ShapeDtypeStruct((n, 1, 1), jnp.float32),  # per-sample sum(x*t)
            jax.ShapeDtypeStruct((n, 1, 1), jnp.float32),  # per-sample sum(x+t)
        ),
        grid_spec=pltpu.PrefetchScalarGridSpec(
            num_scalar_prefetch=0,
            grid=(n, k_steps),
            in_specs=[
                pl.BlockSpec((None, tr, tl), lambda i, k: (i, k, 0)),
                pl.BlockSpec((None, tr, tl), lambda i, k: (i, k, 0)),
            ],
            out_specs=[
                pl.BlockSpec((None, 1, 1), lambda i, k: (i, 0, 0)),
                pl.BlockSpec((None, 1, 1), lambda i, k: (i, 0, 0)),
            ],
        ),
        compiler_params=pltpu.CompilerParams(
            dimension_semantics=("parallel", "arbitrary"),
        ),
    )(x3, t3)

    # Tiny O(N) final combine in plain JAX (lets axis 0 stay "parallel").
    smooth = jnp.float32(1.0)
    inter = inter_sum.reshape(n)
    xt = xt_sum.reshape(n)
    dice = (2.0 * inter + smooth) / (xt + smooth)
    return jnp.float32(1.0) - jnp.sum(dice) / jnp.float32(n)


def _reference_dice_loss(inputs, targets):
    """Pure-JAX reference mirroring the PyTorch forward exactly."""
    n = targets.shape[0]
    smooth = 1.0
    x = inputs.reshape(n, -1).astype(jnp.float32)
    t = targets.reshape(n, -1).astype(jnp.float32)
    inter = x * t
    dice = (2.0 * inter.sum(1) + smooth) / (x.sum(1) + t.sum(1) + smooth)
    return 1.0 - dice.sum() / n


if __name__ == "__main__":
    key = jax.random.PRNGKey(0)
    k_in, k_tgt = jax.random.split(key)

    # Small segmentation-style shapes: NCHW.
    N, C, H, W = 2, 4, 16, 16
    inputs = jax.random.uniform(k_in, (N, C, H, W), dtype=jnp.float32)        # probs in [0, 1)
    targets = jax.random.bernoulli(k_tgt, 0.5, (N, C, H, W)).astype(jnp.float32)

    loss = binary_dice_loss(inputs, targets)
    loss = jax.block_until_ready(loss)

    ref = _reference_dice_loss(inputs, targets)
    assert jnp.allclose(loss, ref, atol=1e-5, rtol=1e-5), (loss, ref)

    print("KERNEL_OK")
</pallas_src>

<mosaic_0001>
module attributes {stable_mosaic.version = 11 : i64} {
  func.func @_dice_kernel(%arg0: i32, %arg1: i32, %arg2: memref<1x2x512xf32, #tpu.memory_space<vmem>>, %arg3: memref<1x2x512xf32, #tpu.memory_space<vmem>>, %arg4: memref<1x1x1xf32, #tpu.memory_space<vmem>>, %arg5: memref<1x1x1xf32, #tpu.memory_space<vmem>>) attributes {dimension_semantics = [#tpu.dimension_semantics<parallel>, #tpu.dimension_semantics<arbitrary>], iteration_bounds = array<i64: 2, 1>, scalar_prefetch = 0 : i64, scratch_operands = 0 : i64, tpu.core_type = #tpu.core_type<tc>, window_params = [{transform_indices = @transform_0, window_bounds = array<i64: 1, 2, 512>}, {transform_indices = @transform_1, window_bounds = array<i64: 1, 2, 512>}, {transform_indices = @transform_2, window_bounds = array<i64: 1, 1, 1>}, {transform_indices = @transform_3, window_bounds = array<i64: 1, 1, 1>}]} {
    %c0_i32 = arith.constant 0 : i32
    %0 = arith.cmpi eq, %arg1, %c0_i32 : i32
    %1 = arith.extui %0 : i1 to i32
    %c0_i32_0 = arith.constant 0 : i32
    %2 = arith.cmpi ne, %1, %c0_i32_0 : i32
    scf.if %2 {
      %cst_19 = arith.constant 0.000000e+00 : f32
      %31 = vector.broadcast %cst_19 : f32 to vector<1x1xf32>
      %c0_20 = arith.constant 0 : index
      %c0_21 = arith.constant 0 : index
      %c0_22 = arith.constant 0 : index
      %32 = vector.load %arg4[%c0_20, %c0_21, %c0_22] : memref<1x1x1xf32, #tpu.memory_space<vmem>>, vector<1x1x1xf32>
      %33 = vector.shape_cast %32 : vector<1x1x1xf32> to vector<1x1xf32>
      %34 = vector.shape_cast %31 : vector<1x1xf32> to vector<1x1x1xf32>
      tpu.vector_store %arg4[%c0_20, %c0_21, %c0_22], %34 {strides = array<i32>} : memref<1x1x1xf32, #tpu.memory_space<vmem>>, vector<1x1x1xf32>,
      %cst_23 = arith.constant 0.000000e+00 : f32
      %35 = vector.broadcast %cst_23 : f32 to vector<1x1xf32>
      %c0_24 = arith.constant 0 : index
      %c0_25 = arith.constant 0 : index
      %c0_26 = arith.constant 0 : index
      %36 = vector.load %arg5[%c0_24, %c0_25, %c0_26] : memref<1x1x1xf32, #tpu.memory_space<vmem>>, vector<1x1x1xf32>
      %37 = vector.shape_cast %36 : vector<1x1x1xf32> to vector<1x1xf32>
      %38 = vector.shape_cast %35 : vector<1x1xf32> to vector<1x1x1xf32>
      tpu.vector_store %arg5[%c0_24, %c0_25, %c0_26], %38 {strides = array<i32>} : memref<1x1x1xf32, #tpu.memory_space<vmem>>, vector<1x1x1xf32>,
    } else {
    }
    %c0 = arith.constant 0 : index
    %c0_1 = arith.constant 0 : index
    %c0_2 = arith.constant 0 : index
    %3 = vector.load %arg2[%c0, %c0_1, %c0_2] : memref<1x2x512xf32, #tpu.memory_space<vmem>>, vector<1x2x512xf32>
    %4 = vector.shape_cast %3 : vector<1x2x512xf32> to vector<2x512xf32>
    %c0_3 = arith.constant 0 : index
    %c0_4 = arith.constant 0 : index
    %c0_5 = arith.constant 0 : index
    %5 = vector.load %arg3[%c0_3, %c0_4, %c0_5] : memref<1x2x512xf32, #tpu.memory_space<vmem>>, vector<1x2x512xf32>
    %6 = vector.shape_cast %5 : vector<1x2x512xf32> to vector<2x512xf32>
    %c0_6 = arith.constant 0 : index
    %c0_7 = arith.constant 0 : index
    %c0_8 = arith.constant 0 : index
    %7 = vector.load %arg4[%c0_6, %c0_7, %c0_8] : memref<1x1x1xf32, #tpu.memory_space<vmem>>, vector<1x1x1xf32>
    %8 = vector.shape_cast %7 : vector<1x1x1xf32> to vector<1x1xf32>
    %9 = arith.mulf %4, %6 : vector<2x512xf32>
    %10 = vector.shape_cast %9 : vector<2x512xf32> to vector<1x2x512xf32>
    %cst = arith.constant dense<0.000000e+00> : vector<1xf32>
    %11 = vector.multi_reduction <add>, %10, %cst [1, 2] : vector<1x2x512xf32> to vector<1xf32>
    %12 = vector.shape_cast %11 : vector<1xf32> to vector<1x1x1xf32>
    %13 = vector.extract %12[0, 0, 0] : f32 from vector<1x1x1xf32>
    %14 = vector.broadcast %13 : f32 to vector<1x1xf32>
    %15 = arith.addf %8, %14 : vector<1x1xf32>
    %c0_9 = arith.constant 0 : index
    %c0_10 = arith.constant 0 : index
    %c0_11 = arith.constant 0 : index
    %16 = vector.load %arg4[%c0_9, %c0_10, %c0_11] : memref<1x1x1xf32, #tpu.memory_space<vmem>>, vector<1x1x1xf32>
    %17 = vector.shape_cast %16 : vector<1x1x1xf32> to vector<1x1xf32>
    %18 = vector.shape_cast %15 : vector<1x1xf32> to vector<1x1x1xf32>
    tpu.vector_store %arg4[%c0_9, %c0_10, %c0_11], %18 {strides = array<i32>} : memref<1x1x1xf32, #tpu.memory_space<vmem>>, vector<1x1x1xf32>,
    %c0_12 = arith.constant 0 : index
    %c0_13 = arith.constant 0 : index
    %c0_14 = arith.constant 0 : index
    %19 = vector.load %arg5[%c0_12, %c0_13, %c0_14] : memref<1x1x1xf32, #tpu.memory_space<vmem>>, vector<1x1x1xf32>
    %20 = vector.shape_cast %19 : vector<1x1x1xf32> to vector<1x1xf32>
    %21 = arith.addf %4, %6 : vector<2x512xf32>
    %22 = vector.shape_cast %21 : vector<2x512xf32> to vector<1x2x512xf32>
    %cst_15 = arith.constant dense<0.000000e+00> : vector<1xf32>
    %23 = vector.multi_reduction <add>, %22, %cst_15 [1, 2] : vector<1x2x512xf32> to vector<1xf32>
    %24 = vector.shape_cast %23 : vector<1xf32> to vector<1x1x1xf32>
    %25 = vector.extract %24[0, 0, 0] : f32 from vector<1x1x1xf32>
    %26 = vector.broadcast %25 : f32 to vector<1x1xf32>
    %27 = arith.addf %20, %26 : vector<1x1xf32>
    %c0_16 = arith.constant 0 : index
    %c0_17 = arith.constant 0 : index
    %c0_18 = arith.constant 0 : index
    %28 = vector.load %arg5[%c0_16, %c0_17, %c0_18] : memref<1x1x1xf32, #tpu.memory_space<vmem>>, vector<1x1x1xf32>
    %29 = vector.shape_cast %28 : vector<1x1x1xf32> to vector<1x1xf32>
    %30 = vector.shape_cast %27 : vector<1x1xf32> to vector<1x1x1xf32>
    tpu.vector_store %arg5[%c0_16, %c0_17, %c0_18], %30 {strides = array<i32>} : memref<1x1x1xf32, #tpu.memory_space<vmem>>, vector<1x1x1xf32>,
    return
  }
  func.func @transform_0(%arg0: i32, %arg1: i32) -> (i32, i32, i32) {
    %c0_i32 = arith.constant 0 : i32
    %c0_i32_0 = arith.constant 0 : i32
    return %arg0, %arg1, %c0_i32 : i32, i32, i32
  }
  func.func @transform_1(%arg0: i32, %arg1: i32) -> (i32, i32, i32) {
    %c0_i32 = arith.constant 0 : i32
    %c0_i32_0 = arith.constant 0 : i32
    return %arg0, %arg1, %c0_i32 : i32, i32, i32
  }
  func.func @transform_2(%arg0: i32, %arg1: i32) -> (i32, i32, i32) {
    %c0_i32 = arith.constant 0 : i32
    %c0_i32_0 = arith.constant 0 : i32
    %c0_i32_1 = arith.constant 0 : i32
    return %arg0, %c0_i32, %c0_i32_0 : i32, i32, i32
  }
  func.func @transform_3(%arg0: i32, %arg1: i32) -> (i32, i32, i32) {
    %c0_i32 = arith.constant 0 : i32
    %c0_i32_0 = arith.constant 0 : i32
    %c0_i32_1 = arith.constant 0 : i32
    return %arg0, %c0_i32, %c0_i32_0 : i32, i32, i32
  }
}

</mosaic_0001>

<bundles_post_ra>
// kernel: binary_dice_loss.1
= control target key start
LH: loop header
LB: loop body
LE: loop exit
PB: predicated region body
PF: predicated region fallthrough
CT: control target
= control target key end

     0   :  { %s532_s12 = smov 0   ;;  %s534_s13 = smov 0   ;;  %s588_s0 = inlined_call_operand.vmem [shape: f32[2,2,512], index: 0, kind: input, shape index: {}]   ;;  %s589_s1 = inlined_call_operand.vmem [shape: f32[2,2,512], index: 1, kind: input, shape index: {}]   ;;  %s590_s2 = inlined_call_operand.vmem [shape: f32[2,1,1], index: 2, kind: output, shape index: {0}]   ;;  %s591_s3 = inlined_call_operand.vmem [shape: f32[2,1,1], index: 3, kind: output, shape index: {1}]  }
   0x1   :  { %s536_s14 = smov 0  }
   0x2 LB: > { %s26_s15 = sadd.s32 1, %s504_s13  ;;  %p447_p0 = scmp.ge.s32.totalorder %s508_s14, 1  ;;  %s508_s14 = sphi %s536_s14, %s14_s14   ;;  %s504_s13 = sphi %s534_s13, %s593_s13   ;;  %s500_s12 = sphi %s532_s12, %s592_s12  }
   0x3   : > { %p28_p1 = scmp.ge.s32.totalorder %s26_s15, 2  ;;  %p174_p2 = scmp.lt.s32.totalorder %s508_s14, 3 }
   0x5   : > { %s595_s15 = smov (%p28_p1, %s26_s15), 0  ;;  %p175_p3 = pnand %p447_p0, %p174_p2 }
   0x6   : > { %p212_p4 = scmp.lt.s32.totalorder (!%p175_p3), %s500_s12, 1  ;;  %v252_v0 = vlaneseq (!%p175_p3)  ;;  %v510_v1 = vmov (!%p175_p3), 1983009808   ;;  %vm269_vm0 = vcmask (!%p175_p3), 1041408   ;;  %vm240_vm1 = vcmask (!%p175_p3), 0  }
   0x7   : > { %178 = sbr.rel (%p175_p3) target bundleno = 244 (0xf4), region = 28  ;;  %v250_v2 = vunpack.c.l.s4 (!%p175_p3), %v510_v1  ;;  %v511_v34 = vmov (!%p175_p3), 0.0  }
   0x8   : > { %v253_v3 = vshrl.u32 (!%p175_p3), %v252_v0, 7 }
   0x9   : > { %v251_v4 = vunpack.c.0.s8 (!%p175_p3), %v250_v2 }
   0xb   : > { %v254_v5 = vsub.s32 (!%p175_p3), %v251_v4, %v253_v3 }
   0xe   : > { %s597_s12 = smov (!%p212_p4, %s500_s12), 1 }
   0xf   : > { %s454_s16 = sshll.u32 %s597_s12, 3  ;;  %s232_s25 = scalar_lea.vmem %s590_s2, %s597_s12 }
  0x10   : > { %s220_s19 = scalar_lea.vmem %s588_s0, %s454_s16  ;;  %s229_s22 = scalar_lea.vmem %s589_s1, %s454_s16  ;;  %241 = vst.msk [vmem:[%s232_s25] sm:$0x1] %vm240_vm1, %v511_v34 }
  0x11   : > { %v243_v6 = vld [vmem:[%s220_s19] sm:$0xff]  ;;  %s235_s28 = scalar_lea.vmem %s591_s3, %s597_s12 }
  0x12   : > { %v244_v7 = vld [vmem:[%s229_s22] sm:$0xff]  ;;  %242 = vst.msk [vmem:[%s235_s28] sm:$0x1] %vm240_vm1, %v511_v34 }
  0x13   : > { %v246_v8 = vmul.f32 %v244_v7, %v243_v6  ;;  %v291_v9 = vadd.f32 %v244_v7, %v243_v6 }
  0x15   : > { %v248_v10 = vcombine.high %v246_v8, %v246_v8  ;;  %v255_v11 = vrot.slane %v246_v8, %v254_v5  ;;  %v293_v12 = vcombine.high %v291_v9, %v291_v9  ;;  %v300_v13 = vrot.slane %v291_v9, %v254_v5 }
  0x17   : > { %v262_v14 = vrot.slane %v248_v10, %v254_v5  ;;  %v263_v15 = vcombine.high %v255_v11, %v255_v11  ;;  %v270_v16 = vsel %vm269_vm0, %v255_v11, 0.0  ;;  %v307_v17 = vrot.slane %v293_v12, %v254_v5  ;;  %v245_v49 = vld [vmem:[%s232_s25] sm:$0x1] }
  0x18   : > { %v308_v18 = vcombine.high %v300_v13, %v300_v13  ;;  %v314_v19 = vsel %vm269_vm0, %v300_v13, 0.0 }
  0x19   : > { %v264_v20 = vcombine.high %v262_v14, %v262_v14  ;;  %v271_v21 = vsel %vm269_vm0, %v263_v15, 0.0  ;;  %v273_v22 = vsel %vm269_vm0, %v262_v14, 0.0  ;;  %v309_v23 = vcombine.high %v307_v17, %v307_v17  ;;  %v290_v52 = vld [vmem:[%s235_s28] sm:$0x1] }
  0x1a   : > { %v272_v24 = vadd.f32 %v271_v21, %v270_v16  ;;  %v315_v25 = vsel %vm269_vm0, %v308_v18, 0.0  ;;  %v317_v26 = vsel %vm269_vm0, %v307_v17, 0.0 }
  0x1b   : > { %v275_v27 = vsel %vm269_vm0, %v264_v20, 0.0  ;;  %v316_v28 = vadd.f32 %v315_v25, %v314_v19  ;;  %v319_v31 = vsel %vm269_vm0, %v309_v23, 0.0 }
  0x1c   : > { %v274_v29 = vadd.f32 %v273_v22, %v272_v24 }
  0x1d   : > { %v318_v30 = vadd.f32 %v317_v26, %v316_v28 }
  0x1e   : > { %v276_v32 = vadd.f32 %v275_v27, %v274_v29 }
  0x1f   : > { %v320_v33 = vadd.f32 %v319_v31, %v318_v30 }
  0x20   : > { %277 = vadd.xlane.f32.xlu0 %v276_v32 }
  0x24   : > { %321 = vadd.xlane.f32.xlu0 %v320_v33 }
  0xad   : > { %v278_v35 = vpop.xlane.xlu0 %277 }
  0xae   : > { %v279_v36 = vrot.slane %v278_v35, 4 }
  0xb0   : > { %v280_v37 = vadd.f32 %v279_v36, %v278_v35 }
  0xb1   : > { %v322_v38 = vpop.xlane.xlu0 %321 }
  0xb2   : > { %v281_v39 = vrot.slane %v280_v37, 2  ;;  %v323_v40 = vrot.slane %v322_v38, 4 }
  0xb4   : > { %v324_v41 = vadd.f32 %v323_v40, %v322_v38  ;;  %v282_v42 = vadd.f32 %v281_v39, %v280_v37 }
  0xb6   : > { %v325_v43 = vrot.slane %v324_v41, 2  ;;  %v283_v44 = vrot.slane %v282_v42, 1 }
  0xb8   : > { %v326_v45 = vadd.f32 %v325_v43, %v324_v41  ;;  %v284_v46 = vadd.f32 %v283_v44, %v282_v42 }
  0xba   : > { %456 = vpush %v284_v46  ;;  %v327_v47 = vrot.slane %v326_v45, 1 }
  0xbc   : > { %v328_v48 = vadd.f32 %v327_v47, %v326_v45 }
  0xbe   : > { %458 = vpush %v328_v48 }
  0xeb   : > { %s457_s29 = spop %456 }
  0xec   : > { %v286_v50 = vstv %s457_s29 }
  0xed   : > { %v287_v51 = vadd.f32 %v286_v50, %v245_v49 }
  0xef   : > { %289 = vst.msk [vmem:[%s232_s25] sm:$0x1] %vm240_vm1, %v287_v51  ;;  %s459_s30 = spop %458 }
  0xf0   : > { %v330_v53 = vstv %s459_s30 }
  0xf1   : > { %v331_v54 = vadd.f32 %v330_v53, %v290_v52 }
  0xf3   : > { %332 = vst.msk [vmem:[%s235_s28] sm:$0x1] %vm240_vm1, %v331_v54 }
  0xf4 PF: > { %s14_s14 = sadd.s32 1, %s508_s14   ;;  %s592_s12 = smov %s504_s13 }
  0xf5   : > { %p11_p5 = scmp.ge.s32.totalorder %s14_s14, 4   ;;  %s593_s13 = smov %s595_s15 }
  0xf7   :  { %13 = sbr.rel (!%p11_p5) target bundleno = 2 (0x2), region = 77 }

</bundles_post_ra>
